<compile_context>
chip_gen: v6e
topology: v6e:2x2x1
jax: 0.10.0
libtpu: 0.0.40
codegen_flags: <defaults>
</compile_context>

<pallas_src>
import jax
import jax.numpy as jnp
from jax.experimental import pallas as pl
from jax.experimental.pallas import tpu as pltpu

LANE = 128
SUBLANE = 8


def _round_up(n, m):
    return ((n + m - 1) // m) * m


# --------------------------------------------------------------------------
# Kernel
# --------------------------------------------------------------------------
def resfcnn_kernel(x_ref, w_in_ref, b_in_ref,
                   w_res_ref, b_res_ref,
                   w_out_ref, b_out_ref, o_ref):
    # Matmul inputs in bf16 (native MXU path on v6e/v7x), accumulate in f32,
    # keep all elementwise work (bias, ReLU, residual) in f32.
    x = x_ref[...].astype(jnp.bfloat16)

    # Input layer: Linear + ReLU.
    h = jnp.dot(x, w_in_ref[...], preferred_element_type=jnp.float32) + b_in_ref[...]
    h = jnp.maximum(h, 0.0)

    # Residual FC block: ReLU(Linear(h)) + h.
    r = jnp.dot(h.astype(jnp.bfloat16), w_res_ref[...],
                preferred_element_type=jnp.float32) + b_res_ref[...]
    r = jnp.maximum(r, 0.0)
    h = r + h

    # Output layer: Linear, no activation.
    o_ref[...] = (jnp.dot(h.astype(jnp.bfloat16), w_out_ref[...],
                          preferred_element_type=jnp.float32)
                  + b_out_ref[...]).astype(o_ref.dtype)


# --------------------------------------------------------------------------
# Parameter prep (one-time: pad to 128 lanes, cast weights to bf16)
# --------------------------------------------------------------------------
def init_params(key, input_dim, hidden_dim, output_dim):
    # xavier_normal_ on weights (std = sqrt(2/(fan_in+fan_out))), zeros biases.
    k1, k2, k3 = jax.random.split(key, 3)

    def xavier(k, fan_in, fan_out):
        std = (2.0 / (fan_in + fan_out)) ** 0.5
        # stored as [in, out] (pre-transposed vs. PyTorch's [out, in])
        return std * jax.random.normal(k, (fan_in, fan_out), dtype=jnp.float32)

    w_in = xavier(k1, input_dim, hidden_dim)
    b_in = jnp.zeros((1, hidden_dim), jnp.float32)
    w_res = xavier(k2, hidden_dim, hidden_dim)
    b_res = jnp.zeros((1, hidden_dim), jnp.float32)
    w_out = xavier(k3, hidden_dim, output_dim)
    b_out = jnp.zeros((1, output_dim), jnp.float32)
    return (w_in, b_in, w_res, b_res, w_out, b_out)


def prepare_params(params, compute_dtype=jnp.bfloat16):
    """Pad feature dims to 128 lanes and cast weights to the MXU dtype (once)."""
    w_in, b_in, w_res, b_res, w_out, b_out = params
    in_dim, hid_dim = w_in.shape
    out_dim = w_out.shape[1]
    in_p, hid_p, out_p = (_round_up(d, LANE) for d in (in_dim, hid_dim, out_dim))

    def pad_w(w, rp, cp):
        r, c = w.shape
        return jnp.pad(w, ((0, rp - r), (0, cp - c))).astype(compute_dtype)

    def pad_b(b, cp):
        return jnp.pad(b, ((0, 0), (0, cp - b.shape[1]))).astype(jnp.float32)

    prepared = (pad_w(w_in, in_p, hid_p), pad_b(b_in, hid_p),
                pad_w(w_res, hid_p, hid_p), pad_b(b_res, hid_p),
                pad_w(w_out, hid_p, out_p), pad_b(b_out, out_p))
    return prepared, (in_dim, hid_dim, out_dim)


# --------------------------------------------------------------------------
# Forward wrapper
# --------------------------------------------------------------------------
def _choose_batch_tiling(B, block_b):
    """Pick (tile, padded_B): >=2 tiles whenever B permits (v7x megacore),
    tile sized to minimize last-tile padding, multiple of 8 sublanes."""
    nt = pl.cdiv(B, block_b)
    if B >= 2 * SUBLANE:
        nt = max(nt, 2)
    tb = _round_up(pl.cdiv(B, nt), SUBLANE)
    b_p = _round_up(B, tb)
    return tb, b_p


def resfcnn_forward(x, prepared, dims, *, block_b=256):
    """x: [B, input_dim] f32. prepared: output of prepare_params (padded, bf16 W)."""
    w_in_p, b_in_p, w_res_p, b_res_p, w_out_p, b_out_p = prepared
    in_dim, hid_dim, out_dim = dims
    B = x.shape[0]
    in_p, hid_p = w_in_p.shape
    out_p = w_out_p.shape[1]

    tb, b_p = _choose_batch_tiling(B, block_b)
    grid = (b_p // tb,)

    # Only the small activation tensor is padded per call; weights were padded
    # once in prepare_params.
    x_p = jnp.pad(x, ((0, b_p - B), (0, in_p - in_dim)))

    # Explicit VMEM budget: weights single-buffered, x/out double-buffered,
    # f32 intermediates (h, r + bf16 cast copies) for one batch tile.
    w_bytes = 2 * (w_in_p.size + w_res_p.size + w_out_p.size)          # bf16
    b_bytes = 4 * (b_in_p.size + b_res_p.size + b_out_p.size)          # f32
    act_bytes = 2 * (tb * in_p * 4) + 2 * (tb * out_p * 4)             # 2x in/out tiles
    inter_bytes = 4 * (tb * hid_p * 4)                                 # h/r + casts
    vmem_limit = w_bytes + b_bytes + act_bytes + inter_bytes + (4 << 20)
    vmem_limit = int(min(max(vmem_limit, 16 << 20), 64 << 20))         # v7x-safe cap

    flops = 2 * b_p * (in_p * hid_p + hid_p * hid_p + hid_p * out_p)
    bytes_accessed = (w_bytes + b_bytes + 4 * x_p.size + 4 * b_p * out_p)

    # Weights / biases: constant block index -> fetched once, single-buffered.
    def _resident(shape):
        return pl.BlockSpec(shape, lambda i: (0, 0), pipeline_mode=pl.Buffered(1))

    out_padded = pl.pallas_call(
        resfcnn_kernel,
        out_shape=jax.ShapeDtypeStruct((b_p, out_p), jnp.float32),
        grid=grid,
        in_specs=[
            # Batch-tiled activations (double-buffered across grid steps).
            pl.BlockSpec((tb, in_p), lambda i: (i, 0)),
            _resident((in_p, hid_p)),
            _resident((1, hid_p)),
            _resident((hid_p, hid_p)),
            _resident((1, hid_p)),
            _resident((hid_p, out_p)),
            _resident((1, out_p)),
        ],
        out_specs=pl.BlockSpec((tb, out_p), lambda i: (i, 0)),
        compiler_params=pltpu.CompilerParams(
            dimension_semantics=("parallel",),   # shard batch tiles across TCs
            vmem_limit_bytes=vmem_limit,
        ),
        cost_estimate=pl.CostEstimate(flops=flops, transcendentals=0,
                                      bytes_accessed=bytes_accessed),
    )(x_p, w_in_p, b_in_p, w_res_p, b_res_p, w_out_p, b_out_p)

    # Slice off batch / lane padding.
    return out_padded[:B, :out_dim]


# --------------------------------------------------------------------------
# Reference (same bf16-matmul / f32-accumulate numerics as the kernel)
# --------------------------------------------------------------------------
def resfcnn_reference(x, params):
    w_in, b_in, w_res, b_res, w_out, b_out = params
    bf = jnp.bfloat16
    h = jnp.dot(x.astype(bf), w_in.astype(bf),
                preferred_element_type=jnp.float32) + b_in
    h = jnp.maximum(h, 0.0)
    r = jnp.dot(h.astype(bf), w_res.astype(bf),
                preferred_element_type=jnp.float32) + b_res
    h = jnp.maximum(r, 0.0) + h
    return jnp.dot(h.astype(bf), w_out.astype(bf),
                   preferred_element_type=jnp.float32) + b_out


if __name__ == "__main__":
    # Small, lane-misaligned shapes on purpose (wrapper pads to 128 lanes).
    # B=16 exercises the >=2-tile grid path (both v7x TensorCores busy).
    B, input_dim, hidden_dim, output_dim, n_layers = 16, 32, 64, 16, 3
    # NOTE: n_layers does not change the compute graph — PyTorch's repeated
    # add_module('resblock', ...) overwrites, leaving exactly one ResFCBlock.

    key = jax.random.PRNGKey(0)
    kx, kp = jax.random.split(key)
    x = jax.random.normal(kx, (B, input_dim), dtype=jnp.float32)
    params = init_params(kp, input_dim, hidden_dim, output_dim)
    prepared, dims = prepare_params(params)

    y = resfcnn_forward(x, prepared, dims)
    y = jax.block_until_ready(y)

    y_ref = resfcnn_reference(x, params)
    assert y.shape == (B, output_dim)
    assert jnp.allclose(y, y_ref, atol=1e-3, rtol=1e-3), (
        float(jnp.max(jnp.abs(y - y_ref))))

    print("KERNEL_OK")
</pallas_src>

<mosaic_0001>
module attributes {stable_mosaic.version = 11 : i64} {
  func.func @resfcnn_kernel(%arg0: i32, %arg1: memref<8x128xf32, #tpu.memory_space<vmem>>, %arg2: memref<128x128xbf16, #tpu.memory_space<vmem>>, %arg3: memref<1x128xf32, #tpu.memory_space<vmem>>, %arg4: memref<128x128xbf16, #tpu.memory_space<vmem>>, %arg5: memref<1x128xf32, #tpu.memory_space<vmem>>, %arg6: memref<128x128xbf16, #tpu.memory_space<vmem>>, %arg7: memref<1x128xf32, #tpu.memory_space<vmem>>, %arg8: memref<8x128xf32, #tpu.memory_space<vmem>>) attributes {dimension_semantics = [#tpu.dimension_semantics<parallel>], iteration_bounds = array<i64: 2>, scalar_prefetch = 0 : i64, scratch_operands = 0 : i64, tpu.core_type = #tpu.core_type<tc>, window_params = [{transform_indices = @transform_0, window_bounds = array<i64: 8, 128>}, {pipeline_mode = #tpu.pipeline_mode<synchronous>, transform_indices = @transform_1, window_bounds = array<i64: 128, 128>}, {pipeline_mode = #tpu.pipeline_mode<synchronous>, transform_indices = @transform_2, window_bounds = array<i64: 1, 128>}, {pipeline_mode = #tpu.pipeline_mode<synchronous>, transform_indices = @transform_3, window_bounds = array<i64: 128, 128>}, {pipeline_mode = #tpu.pipeline_mode<synchronous>, transform_indices = @transform_4, window_bounds = array<i64: 1, 128>}, {pipeline_mode = #tpu.pipeline_mode<synchronous>, transform_indices = @transform_5, window_bounds = array<i64: 128, 128>}, {pipeline_mode = #tpu.pipeline_mode<synchronous>, transform_indices = @transform_6, window_bounds = array<i64: 1, 128>}, {transform_indices = @transform_7, window_bounds = array<i64: 8, 128>}]} {
    %c0 = arith.constant 0 : index
    %c0_0 = arith.constant 0 : index
    %0 = vector.load %arg1[%c0, %c0_0] : memref<8x128xf32, #tpu.memory_space<vmem>>, vector<8x128xf32>
    %1 = arith.truncf %0 : vector<8x128xf32> to vector<8x128xbf16>
    %c0_1 = arith.constant 0 : index
    %c0_2 = arith.constant 0 : index
    %2 = vector.load %arg2[%c0_1, %c0_2] : memref<128x128xbf16, #tpu.memory_space<vmem>>, vector<128x128xbf16>
    %cst = arith.constant dense<0.000000e+00> : vector<8x128xf32>
    %3 = tpu.matmul %1, %2, %cst {dimension_numbers = #tpu.dot_dimension_numbers<[1], [0], [0], [1], [0, 0, 1, 1], [], []>} : vector<8x128xbf16>, vector<128x128xbf16>, vector<8x128xf32> -> vector<8x128xf32>
    %c0_3 = arith.constant 0 : index
    %c0_4 = arith.constant 0 : index
    %4 = vector.load %arg3[%c0_3, %c0_4] : memref<1x128xf32, #tpu.memory_space<vmem>>, vector<1x128xf32>
    %5 = vector.broadcast %4 : vector<1x128xf32> to vector<8x128xf32>
    %6 = arith.addf %3, %5 : vector<8x128xf32>
    %cst_5 = arith.constant 0.000000e+00 : f32
    %7 = vector.broadcast %cst_5 : f32 to vector<8x128xf32>
    %8 = arith.maximumf %6, %7 : vector<8x128xf32>
    %9 = arith.truncf %8 : vector<8x128xf32> to vector<8x128xbf16>
    %c0_6 = arith.constant 0 : index
    %c0_7 = arith.constant 0 : index
    %10 = vector.load %arg4[%c0_6, %c0_7] : memref<128x128xbf16, #tpu.memory_space<vmem>>, vector<128x128xbf16>
    %cst_8 = arith.constant dense<0.000000e+00> : vector<8x128xf32>
    %11 = tpu.matmul %9, %10, %cst_8 {dimension_numbers = #tpu.dot_dimension_numbers<[1], [0], [0], [1], [0, 0, 1, 1], [], []>} : vector<8x128xbf16>, vector<128x128xbf16>, vector<8x128xf32> -> vector<8x128xf32>
    %c0_9 = arith.constant 0 : index
    %c0_10 = arith.constant 0 : index
    %12 = vector.load %arg5[%c0_9, %c0_10] : memref<1x128xf32, #tpu.memory_space<vmem>>, vector<1x128xf32>
    %13 = vector.broadcast %12 : vector<1x128xf32> to vector<8x128xf32>
    %14 = arith.addf %11, %13 : vector<8x128xf32>
    %cst_11 = arith.constant 0.000000e+00 : f32
    %15 = vector.broadcast %cst_11 : f32 to vector<8x128xf32>
    %16 = arith.maximumf %14, %15 : vector<8x128xf32>
    %17 = arith.addf %16, %8 : vector<8x128xf32>
    %18 = arith.truncf %17 : vector<8x128xf32> to vector<8x128xbf16>
    %c0_12 = arith.constant 0 : index
    %c0_13 = arith.constant 0 : index
    %19 = vector.load %arg6[%c0_12, %c0_13] : memref<128x128xbf16, #tpu.memory_space<vmem>>, vector<128x128xbf16>
    %cst_14 = arith.constant dense<0.000000e+00> : vector<8x128xf32>
    %20 = tpu.matmul %18, %19, %cst_14 {dimension_numbers = #tpu.dot_dimension_numbers<[1], [0], [0], [1], [0, 0, 1, 1], [], []>} : vector<8x128xbf16>, vector<128x128xbf16>, vector<8x128xf32> -> vector<8x128xf32>
    %c0_15 = arith.constant 0 : index
    %c0_16 = arith.constant 0 : index
    %21 = vector.load %arg7[%c0_15, %c0_16] : memref<1x128xf32, #tpu.memory_space<vmem>>, vector<1x128xf32>
    %22 = vector.broadcast %21 : vector<1x128xf32> to vector<8x128xf32>
    %23 = arith.addf %20, %22 : vector<8x128xf32>
    %c0_17 = arith.constant 0 : index
    %c0_18 = arith.constant 0 : index
    %24 = vector.load %arg8[%c0_17, %c0_18] : memref<8x128xf32, #tpu.memory_space<vmem>>, vector<8x128xf32>
    tpu.vector_store %arg8[%c0_17, %c0_18], %23 {strides = array<i32>} : memref<8x128xf32, #tpu.memory_space<vmem>>, vector<8x128xf32>,
    return
  }
  func.func @transform_0(%arg0: i32) -> (i32, i32) {
    %c0_i32 = arith.constant 0 : i32
    %c0_i32_0 = arith.constant 0 : i32
    return %arg0, %c0_i32 : i32, i32
  }
  func.func @transform_1(%arg0: i32) -> (i32, i32) {
    %c0_i32 = arith.constant 0 : i32
    %c0_i32_0 = arith.constant 0 : i32
    %c0_i32_1 = arith.constant 0 : i32
    return %c0_i32, %c0_i32_0 : i32, i32
  }
  func.func @transform_2(%arg0: i32) -> (i32, i32) {
    %c0_i32 = arith.constant 0 : i32
    %c0_i32_0 = arith.constant 0 : i32
    %c0_i32_1 = arith.constant 0 : i32
    return %c0_i32, %c0_i32_0 : i32, i32
  }
  func.func @transform_3(%arg0: i32) -> (i32, i32) {
    %c0_i32 = arith.constant 0 : i32
    %c0_i32_0 = arith.constant 0 : i32
    %c0_i32_1 = arith.constant 0 : i32
    return %c0_i32, %c0_i32_0 : i32, i32
  }
  func.func @transform_4(%arg0: i32) -> (i32, i32) {
    %c0_i32 = arith.constant 0 : i32
    %c0_i32_0 = arith.constant 0 : i32
    %c0_i32_1 = arith.constant 0 : i32
    return %c0_i32, %c0_i32_0 : i32, i32
  }
  func.func @transform_5(%arg0: i32) -> (i32, i32) {
    %c0_i32 = arith.constant 0 : i32
    %c0_i32_0 = arith.constant 0 : i32
    %c0_i32_1 = arith.constant 0 : i32
    return %c0_i32, %c0_i32_0 : i32, i32
  }
  func.func @transform_6(%arg0: i32) -> (i32, i32) {
    %c0_i32 = arith.constant 0 : i32
    %c0_i32_0 = arith.constant 0 : i32
    %c0_i32_1 = arith.constant 0 : i32
    return %c0_i32, %c0_i32_0 : i32, i32
  }
  func.func @transform_7(%arg0: i32) -> (i32, i32) {
    %c0_i32 = arith.constant 0 : i32
    %c0_i32_0 = arith.constant 0 : i32
    return %arg0, %c0_i32 : i32, i32
  }
}

</mosaic_0001>

<bundles_post_ra>
// kernel: tpu_custom_call.1
= control target key start
LH: loop header
LB: loop body
LE: loop exit
PB: predicated region body
PF: predicated region fallthrough
CT: control target
= control target key end

     0   :  { %s1494_s0 = inlined_call_operand.hbm [shape: f32[16,128], index: 0, kind: input, shape index: {}]   ;;  %s1495_s1 = inlined_call_operand.hbm [shape: bf16[128,128], index: 1, kind: input, shape index: {}]   ;;  %s1496_s2 = inlined_call_operand.vmem [shape: f32[1,128], index: 2, kind: input, shape index: {}]   ;;  %s1497_s3 = inlined_call_operand.hbm [shape: bf16[128,128], index: 3, kind: input, shape index: {}]   ;;  %s1498_s4 = inlined_call_operand.vmem [shape: f32[1,128], index: 4, kind: input, shape index: {}]   ;;  %s1499_s5 = inlined_call_operand.hbm [shape: bf16[128,128], index: 5, kind: input, shape index: {}]   ;;  %s1500_s6 = inlined_call_operand.vmem [shape: f32[1,128], index: 6, kind: input, shape index: {}]   ;;  %s1501_s7 = inlined_call_operand.hbm [shape: f32[16,128], index: 7, kind: output, shape index: {}]  }
   0x1   :  { %1506 = sst [smem:[#allocation15_spill]] %s1495_s1 }
   0x2   :  { %1507 = sst [smem:[#allocation16_spill]] %s1497_s3 }
   0x3   :  { %12 = vsyncpa [#allocation3], 0 }
   0x4   :  { %14 = vsyncpa [#allocation3 + $0x1], 0 }
   0x5   :  { %15 = vsyncpa [#allocation6], 0 }
   0x6   :  { %16 = vsyncpa [#allocation9], 0 }
   0x7   :  { %17 = vsyncpa [#allocation4], 0 }
   0x8   :  { %19 = vsyncpa [#allocation4 + $0x1], 0  ;;  %s1259_s24 = smov 0   ;;  %s1261_s25 = smov 0  }
   0x9   :  { %s1263_s26 = smov 0   ;;  %s1265_s27 = smov 0  }
   0xa LB: > { %s1280_s28 = sadd.s32 4294967295, %s1208_s27   ;;  %s793_s29 = sadd.s32 4294967294, %s1208_s27   ;;  %s1208_s27 = sphi %s1265_s27, %s1529_s27   ;;  %s1204_s26 = sphi %s1263_s26, %s1528_s26   ;;  %s1200_s25 = sphi %s1261_s25, %s1527_s25   ;;  %s1196_s24 = sphi %s1259_s24, %s1526_s24  }
   0xb   : > { %p45_p0 = scmp.ne.s32.totalorder %s1200_s25, %s1196_s24  ;;  %p1502_p1 = scmp.eq.s32.totalorder %s1280_s28, 0 }
   0xc   : > { %p201_p3 = scmp.eq.s32.totalorder %s793_s29, 1  ;;  %p794_p5 = scmp.ge.s32.totalorder %s1208_s27, 1 }
   0xd   : > { %p1289_p4 = por %p1502_p1, %p45_p0  ;;  %p208_p7 = scmp.lt.s32.totalorder %s1208_s27, 3 }
   0xe   : > { %p1294_p6 = por %p201_p3, %p45_p0  ;;  %s1210_s10 = smov [#allocation5]  }
   0xf   : > { %s1508_s30 = scalar_select %p1289_p4, 1, 0 }
  0x10   : > { %s1509_s8 = scalar_select %p1294_p6, 1, 0 }
  0x11   : > { %p1299_p8 = pnand %p794_p5, %p208_p7  ;;  %s220_s11 = sshll.u32 %s1210_s10, 4  ;;  %s221_s11 = int_to_ptr.vmem [resolvable:$true] %s220_s11 }
  0x12   : > { %s1211_s13 = smov [#allocation7]   ;;  %s1212_s15 = smov [#allocation8]  }
  0x13   : > { %s1510_s9 = scalar_select %p1299_p8, 1, 0 }
  0x14   : > { %p941_p9 = pneg %p1299_p8  ;;  %s236_s14 = sshll.u32 %s1211_s13, 4  ;;  %s237_s14 = int_to_ptr.vmem [resolvable:$true] %s236_s14 }
  0x15   : > { %s252_s16 = sshll.u32 %s1212_s15, 4  ;;  %s1041_s17 = scalar_lea.vmem %s221_s11, 1024  ;;  %s253_s16 = int_to_ptr.vmem [resolvable:$true] %s252_s16 }
  0x16   : > { %p1308_p11 = pnand %p941_p9, %p1502_p1  ;;  %p1042_p13 = scmp.ne.s32.totalorder %s221_s11, %s1041_s17 }
  0x17   : > { %p1049_p5 = scmp.lt.s32.totalorder %s221_s11, %s221_s11  ;;  %p1050_p7 = scmp.lt.s32.totalorder %s1041_s17, %s1041_s17 }
  0x18   : > { %p1032_p12 = pneg %p1308_p11 }
  0x19   : > { %p1051_p9 = por %p1050_p7, %p1049_p5 }
  0x1a   : > { %p1044_p0 = pnand %p1042_p13, %p1032_p12 }
  0x1c   : > { %p1045_p3 = pneg %p1044_p0 }
  0x1e   : > { %p1052_p10 = pnand %p1051_p9, %p1045_p3 }
  0x20   : > { %1055 = shalt.err (!%p1052_p10)
}
  0x21   : > { %s1213_s18 = smov 64   ;;  %s1214_s19 = smov 4  }
  0x22   : > { %s1512_s1 = sld [smem:[#allocation15_spill]]  ;;  %s1067_s22 = scalar_lea.vmem %s237_s14, 1024 }
  0x23   : > { %p1068_p1 = scmp.ne.s32.totalorder %s237_s14, %s1067_s22  ;;  %p1075_p2 = scmp.lt.s32.totalorder %s237_s14, %s237_s14 }
  0x24   : > { %p1076_p6 = scmp.lt.s32.totalorder %s1067_s22, %s1067_s22 }
  0x25   : > { %p1070_p13 = pnand %p1068_p1, %p1032_p12 }
  0x26   : > { %p1077_p5 = por %p1076_p6, %p1075_p2 }
  0x27   : > { %p1071_p0 = pneg %p1070_p13 }
  0x28   : > { %944 = dma.hbm_to_vmem [thread:$0]  (!%p1308_p11), %s1512_s1, 1024, %s221_s11, [#allocation6], %s1213_s18, %s1213_s18, %s1214_s19  }
  0x29   : > { %p1078_p3 = pnand %p1077_p5, %p1071_p0 }
  0x2b   : > { %1081 = shalt.err (!%p1078_p3)
}
  0x2c   : > { %s1513_s3 = sld [smem:[#allocation16_spill]]  ;;  %s1093_s10 = scalar_lea.vmem %s253_s16, 1024 }
  0x2d   : > { %p1094_p10 = scmp.ne.s32.totalorder %s253_s16, %s1093_s10  ;;  %p1101_p9 = scmp.lt.s32.totalorder %s253_s16, %s253_s16 }
  0x2e   : > { %p1102_p13 = scmp.lt.s32.totalorder %s1093_s10, %s1093_s10 }
  0x2f   : > { %p1096_p7 = pnand %p1094_p10, %p1032_p12 }
  0x30   : > { %p1103_p4 = por %p1102_p13, %p1101_p9 }
  0x31   : > { %p1097_p1 = pneg %p1096_p7 }
  0x32   : > { %947 = dma.hbm_to_vmem [thread:$0]  (!%p1308_p11), %s1513_s3, 1024, %s237_s14, [#allocation6], %s1213_s18, %s1213_s18, %s1214_s19  }
  0x33   : > { %p1104_p2 = pnand %p1103_p4, %p1097_p1 }
  0x35   : > { %1107 = shalt.err (!%p1104_p2)
}
  0x36   : > { %950 = dma.hbm_to_vmem [thread:$0]  (!%p1308_p11), %s1499_s5, 1024, %s253_s16, [#allocation9], %s1213_s18, %s1213_s18, %s1214_s19  }
  0x37   : > { %s1339_s14 = sadd.s32 1, %s1208_s27   ;;  %s32_s12 = sadd.s32 1, %s1204_s26 }
  0x38   : > { %s29_s15 = ssub.s32 %s1208_s27, %s1339_s14  ;;  %p39_p6 = scmp.ne.s32.totalorder %s1204_s26, %s1200_s25 }
  0x39   : > { %p30_p4 = scmp.eq.s32.totalorder %s29_s15, 0  ;;  %p40_p12 = scmp.eq.s32.totalorder %s1208_s27, 0 }
  0x3a   : > { %p962_p0 = scmp.lt.s32.totalorder %s1208_s27, 2  ;;  %p1514_p3 = scmp.eq.s32.totalorder %s1280_s28, 1 }
  0x3b   : > { %s1349_s17 = scalar_select %p30_p4, %s1204_s26, %s32_s12  }
  0x3c   : > { %p41_p5 = por %p40_p12, %p39_p6  ;;  %p1353_p10 = por %p1514_p3, %p39_p6 }
  0x3d   : > { %s269_s21 = sand.u32 1, %s1204_s26   ;;  %s800_s22 = sshll.u32 %s1208_s27, 7 }
  0x3e   : > { %s1515_s20 = scalar_select %p1353_p10, 1, 0 }
  0x3f   : > { %s799_s16 = sshll.u32 %s269_s21, 3  ;;  %s1362_s23 = scalar_lea.hbm %s1494_s0, %s800_s22 }
  0x40   : > { %s273_s29 = scalar_lea.vmem [#allocation2], %s799_s16  ;;  %p1364_p11 = pnand %p962_p0, %p41_p5 }
  0x41   : > { %s280_s10 = sshll.u32 %s273_s29, 4  ;;  %s270_s13 = scalar_lea.sflag [#allocation3], %s269_s21  ;;  %s281_s10 = int_to_ptr.vmem [resolvable:$true] %s280_s10 }
  0x42   : > { %s1108_s15 = scalar_lea.hbm %s1362_s23, 128  ;;  %p1110_p1 = pneg %p1364_p11 }
  0x43   : > { %p1109_p7 = scmp.ne.s32.totalorder %s1362_s23, %s1108_s15  ;;  %s1113_s18 = scalar_lea.hbm %s1494_s0, 256 }
  0x44   : > { %p1114_p2 = scmp.lt.s32.totalorder %s1362_s23, %s1494_s0  ;;  %p1115_p4 = scmp.lt.s32.totalorder %s1113_s18, %s1108_s15 }
  0x45   : > { %p1111_p9 = pnand %p1110_p1, %p1109_p7 }
  0x46   : > { %p1116_p6 = por %p1115_p4, %p1114_p2 }
  0x47   : > { %p1112_p13 = pneg %p1111_p9 }
  0x49   : > { %p1117_p12 = pnand %p1116_p6, %p1112_p13 }
  0x4b   : > { %1120 = shalt.err (!%p1117_p12)
}
  0x4c   : > { %s1121_s29 = scalar_lea.vmem %s281_s10, 128  ;;  %s1215_s21 = smov [#allocation2]  }
  0x4d   : > { %p1122_p0 = scmp.ne.s32.totalorder %s281_s10, %s1121_s29  ;;  %s1126_s1 = sshll.u32 %s1215_s21, 4  ;;  %s1127_s1 = int_to_ptr.vmem [resolvable:$false] %s1126_s1 }
  0x4e   : > { %s1128_s3 = scalar_lea.vmem %s1127_s1, 256  ;;  %p1129_p7 = scmp.lt.s32.totalorder %s281_s10, %s1127_s1 }
  0x4f   : > { %p1124_p5 = pnand %p1122_p0, %p1110_p1  ;;  %p1130_p9 = scmp.lt.s32.totalorder %s1128_s3, %s1121_s29 }
  0x51   : > { %p1125_p3 = pneg %p1124_p5  ;;  %p1131_p10 = por %p1130_p9, %p1129_p7 }
  0x53   : > { %p1132_p8 = pnand %p1131_p10, %p1125_p3 }
  0x55   : > { %1135 = shalt.err (!%p1132_p8)
}
  0x56   : > { %954 = dma.hbm_to_vmem [thread:$0]  (!%p1364_p11), %s1362_s23, 128, %s281_s10, %s270_s13  }
  0x57   : > { %p1517_p13 = scmp.ne.s32.totalorder %s1510_s9, 0 }
  0x58   : > { %s1385_s15 = sand.u32 (!%p1517_p13), 1, %s1200_s25   ;;  %p1518_p8 = scmp.ne.s32.totalorder (!%p1517_p13), %s1508_s30, 0 }
  0x59   : > { %289 = sbr.rel (%p1517_p13) target bundleno = 744 (0x2e8), region = 48  ;;  %s802_s12 = sshll.u32 (!%p1517_p13), %s1385_s15, 3 }
  0x5a   : > { %s292_s1 = scalar_lea.sflag (!%p1517_p13), [#allocation3], %s1385_s15  ;;  %s1391_s3 = scalar_lea.vmem (!%p1517_p13), [#allocation2], %s802_s12 }
  0x5e   : > { %1179 = dma.done.wait (%p1518_p8), %s292_s1, 128  }
  0x5f   : > { %1181 = vsyncadd (%p1518_p8), %s292_s1, 4294967168  ;;  %p1519_p10 = scmp.eq.s32.totalorder %s1280_s28, 0 }
  0x61   : > { %1183 = dma.done.wait (%p1519_p10), [#allocation6], 2048   ;;  %p1520_p11 = pmov %p1519_p10 }
  0x62   : > { %p1521_p1 = pmov %p1519_p10 }
  0x63   : > { %1185 = vsyncadd (%p1520_p11), [#allocation6], 4294965248 }
  0x64   : > { %1187 = dma.done.wait (%p1521_p1), [#allocation9], 1024   ;;  %p1522_p2 = pmov %p1521_p1 }
  0x65   : > { %v1216_v0 = vmov 0.0   ;;  %vm1217_vm0 = vmmov 0   ;;  %v1006_v1 = vld [vmem:[#allocation5 + $0x38] sm:$0xff]   ;;  %v1007_v2 = vld [vmem:[#allocation5 + $0x30] sm:$0xff]   ;;  %v1008_v3 = vld [vmem:[#allocation5 + $0x28] sm:$0xff]   ;;  %s835_s22 = sshll.u32 %s1280_s28, 7 }
  0x66   : > { %1189 = vsyncadd (%p1522_p2), [#allocation9], 4294966272  ;;  %865 = vmatprep.subr.bf16.mxu0 %v1216_v0  ;;  %881 = vmatprep.mubr.msk.bf16.mxu0 %vm1217_vm0, %v1216_v0  ;;  %v1014_v4 = vld [vmem:[#allocation7 + $0x38] sm:$0xff]   ;;  %v1009_v5 = vld [vmem:[#allocation5 + $0x20] sm:$0xff]   ;;  %s337_s18 = scalar_lea.vmem [#allocation10], %s802_s12  ;;  %s1451_s21 = scalar_lea.hbm %s1501_s7, %s835_s22 }
  0x67   : > { %885 = vmatprep.subr.bf16.mxu1 %v1216_v0  ;;  %901 = vmatprep.mubr.msk.bf16.mxu1 %vm1217_vm0, %v1216_v0  ;;  %v1015_v6 = vld [vmem:[#allocation7 + $0x30] sm:$0xff]   ;;  %v1010_v7 = vld [vmem:[#allocation5 + $0x18] sm:$0xff]   ;;  %v1016_v8 = vld [vmem:[#allocation7 + $0x28] sm:$0xff]   ;;  %s694_s19 = sshll.u32 %s337_s18, 4  ;;  %s681_s1 = scalar_lea.sflag [#allocation4], %s1385_s15  ;;  %s1453_s19 = int_to_ptr.vmem [resolvable:$true] %s694_s19 }
  0x68   : > { %866 = vmatpush3.bf16.msra.mxu0 %v1006_v1  ;;  %886 = vmatpush3.bf16.msra.mxu1 %v1014_v4  ;;  %v1011_v9 = vld [vmem:[#allocation5 + $0x10] sm:$0xff]   ;;  %v1017_v10 = vld [vmem:[#allocation7 + $0x20] sm:$0xff]   ;;  %v1012_v11 = vld [vmem:[#allocation5 + $0x8] sm:$0xff]   ;;  %s1136_s28 = scalar_lea.vmem %s1453_s19, 128  ;;  %p1523_p6 = scmp.ne.s32.totalorder %s1515_s20, 0 }
  0x69   : > { %867 = vmatprep.subr.bf16.mxu0 %v1216_v0  ;;  %887 = vmatprep.subr.bf16.mxu1 %v1216_v0  ;;  %v1018_v12 = vld [vmem:[#allocation7 + $0x18] sm:$0xff]   ;;  %v1013_v13 = vld [vmem:[#allocation5] sm:$0xff]   ;;  %v1019_v15 = vld [vmem:[#allocation7 + $0x10] sm:$0xff]   ;;  %p1137_p4 = scmp.ne.s32.totalorder %s1453_s19, %s1136_s28  ;;  %s1218_s12 = smov [#allocation10]  }
  0x6a   : > { %v339_v14 = vld [vmem:[%s1391_s3] sm:$0xff]  ;;  %v1020_v17 = vld [vmem:[#allocation7 + $0x8] sm:$0xff]   ;;  %v1021_v18 = vld [vmem:[#allocation7] sm:$0xff]   ;;  %s1140_s3 = sshll.u32 %s1218_s12, 4  ;;  %s1141_s3 = int_to_ptr.vmem [resolvable:$false] %s1140_s3 }
  0x6b   : > { %v340_v16 = vpack.c.bf16 %v339_v14, %v339_v14  ;;  %v1022_v19 = vld [vmem:[#allocation8 + $0x38] sm:$0xff]   ;;  %v1023_v20 = vld [vmem:[#allocation8 + $0x30] sm:$0xff]   ;;  %v1024_v21 = vld [vmem:[#allocation8 + $0x28] sm:$0xff]   ;;  %p1138_p12 = pnand %p1137_p4, %p1523_p6  ;;  %s1142_s30 = scalar_lea.vmem %s1141_s3, 256 }
  0x6c   : > { %868 = vmatpush3.bf16.msra.mxu0 %v1007_v2  ;;  %888 = vmatpush3.bf16.msra.mxu1 %v1015_v6  ;;  %v1025_v22 = vld [vmem:[#allocation8 + $0x20] sm:$0xff]   ;;  %v1026_v23 = vld [vmem:[#allocation8 + $0x18] sm:$0xff]   ;;  %v1027_v24 = vld [vmem:[#allocation8 + $0x10] sm:$0xff]   ;;  %p1143_p5 = scmp.lt.s32.totalorder %s1453_s19, %s1141_s3  ;;  %p1144_p3 = scmp.lt.s32.totalorder %s1142_s30, %s1136_s28 }
  0x6d   : > { %869 = vmatprep.subr.bf16.mxu0 %v1216_v0  ;;  %889 = vmatprep.subr.bf16.mxu1 %v1216_v0  ;;  %v807_v25 = vld [vmem:[%s1496_s2] ss:$0 sm:$0xff]  ;;  %v1028_v33 = vld [vmem:[#allocation8 + $0x8] sm:$0xff]   ;;  %v1029_v34 = vld [vmem:[#allocation8] sm:$0xff]   ;;  %p1139_p0 = pneg %p1138_p12 }
  0x6e   : > { %v816_v35 = vld [vmem:[%s1498_s4] ss:$0 sm:$0xff]  ;;  %p1145_p7 = por %p1144_p3, %p1143_p5 }
  0x6f   : > { %v825_v44 = vld [vmem:[%s1500_s6] ss:$0 sm:$0xff] }
  0x70   : > { %870 = vmatpush3.bf16.msra.mxu0 %v1008_v3  ;;  %890 = vmatpush3.bf16.msra.mxu1 %v1016_v8  ;;  %p1146_p9 = pnand %p1145_p7, %p1139_p0 }
  0x71   : > { %871 = vmatprep.subr.bf16.mxu0 %v1216_v0  ;;  %891 = vmatprep.subr.bf16.mxu1 %v1216_v0 }
  0x74   : > { %872 = vmatpush3.bf16.msra.mxu0 %v1009_v5  ;;  %892 = vmatpush3.bf16.msra.mxu1 %v1017_v10 }
  0x75   : > { %873 = vmatprep.subr.bf16.mxu0 %v1216_v0  ;;  %893 = vmatprep.subr.bf16.mxu1 %v1216_v0 }
  0x78   : > { %874 = vmatpush3.bf16.msra.mxu0 %v1010_v7  ;;  %894 = vmatpush3.bf16.msra.mxu1 %v1018_v12 }
  0x79   : > { %875 = vmatprep.subr.bf16.mxu0 %v1216_v0  ;;  %895 = vmatprep.subr.bf16.mxu1 %v1216_v0 }
  0x7c   : > { %876 = vmatpush3.bf16.msra.mxu0 %v1011_v9  ;;  %896 = vmatpush3.bf16.msra.mxu1 %v1019_v15 }
  0x7d   : > { %877 = vmatprep.subr.bf16.mxu0 %v1216_v0  ;;  %897 = vmatprep.subr.bf16.mxu1 %v1216_v0 }
  0x80   : > { %878 = vmatpush3.bf16.msra.mxu0 %v1012_v11  ;;  %898 = vmatpush3.bf16.msra.mxu1 %v1020_v17 }
  0x81   : > { %879 = vmatprep.subr.bf16.mxu0 %v1216_v0  ;;  %899 = vmatprep.subr.bf16.mxu1 %v1216_v0 }
  0x84   : > { %880 = vmatpush3.bf16.msra.mxu0 %v1013_v13  ;;  %900 = vmatpush3.bf16.msra.mxu1 %v1021_v18 }
  0x85   : > { %905 = vmatprep.subr.bf16.mxu0 %v1216_v0 }
  0x87   : > { %882 = vmatmul.mubr.bf16.vlgmr.msra.gmra.mxu0 %v340_v16 }
  0x88   : > { %921 = vmatprep.mubr.msk.bf16.mxu0 %vm1217_vm0, %v1216_v0  ;;  %906 = vmatpush3.bf16.msra.mxu0 %v1022_v19 }
  0x89   : > { %907 = vmatprep.subr.bf16.mxu0 %v1216_v0 }
  0x8c   : > { %908 = vmatpush3.bf16.msra.mxu0 %v1023_v20 }
  0x8d   : > { %909 = vmatprep.subr.bf16.mxu0 %v1216_v0 }
  0x90   : > { %910 = vmatpush3.bf16.msra.mxu0 %v1024_v21 }
  0x91   : > { %911 = vmatprep.subr.bf16.mxu0 %v1216_v0 }
  0x94   : > { %912 = vmatpush3.bf16.msra.mxu0 %v1025_v22 }
  0x95   : > { %913 = vmatprep.subr.bf16.mxu0 %v1216_v0 }
  0x98   : > { %914 = vmatpush3.bf16.msra.mxu0 %v1026_v23 }
  0x99   : > { %915 = vmatprep.subr.bf16.mxu0 %v1216_v0 }
  0x9c   : > { %916 = vmatpush3.bf16.msra.mxu0 %v1027_v24 }
  0x9d   : > { %917 = vmatprep.subr.bf16.mxu0 %v1216_v0 }
  0xa0   : > { %918 = vmatpush3.bf16.msra.mxu0 %v1028_v33 }
  0xa1   : > { %919 = vmatprep.subr.bf16.mxu0 %v1216_v0 }
  0xa4   : > { %920 = vmatpush3.bf16.msra.mxu0 %v1029_v34 }
 0x147   : > { %v446_v26 = vpop.f32.mrf.mxu0 }
 0x148   : > { %v447_v27 = vadd.f32 %v807_v25, %v446_v26 }
 0x149   : > { %v883_v28 = vpop.f32.mrf.mxu0 }
 0x14a   : > { %v452_v29 = vmax.f32 %v447_v27, 0.0 }
 0x14b   : > { %v449_v30 = vpop.f32.mrf.mxu0 }
 0x14c   : > { %v453_v31 = vpack.c.bf16 %v452_v29, %v452_v29 }
 0x14d   : > { %v884_v32 = vpop.f32.mrf.mxu0 }
 0x14e   : > { %902 = vmatmul.mubr.bf16.vlgmr.msra.gmra.mxu1 %v453_v31 }
 0x20e   : > { %v559_v36 = vpop.f32.mrf.mxu1 }
 0x20f   : > { %v560_v37 = vadd.f32 %v816_v35, %v559_v36 }
 0x210   : > { %v903_v38 = vpop.f32.mrf.mxu1 }
 0x211   : > { %v565_v39 = vmax.f32 %v560_v37, 0.0 }
 0x212   : > { %v562_v40 = vpop.f32.mrf.mxu1 }
 0x213   : > { %v566_v41 = vadd.f32 %v565_v39, %v452_v29 }
 0x214   : > { %v904_v42 = vpop.f32.mrf.mxu1 }
 0x215   : > { %v567_v43 = vpack.c.bf16 %v566_v41, %v566_v41 }
 0x217   : > { %922 = vmatmul.mubr.bf16.vlgmr.msra.gmra.mxu0 %v567_v43 }
 0x2d7   : > { %v673_v45 = vpop.f32.mrf.mxu0 }
 0x2d8   : > { %v674_v46 = vadd.f32 %v825_v44, %v673_v45 }
 0x2d9   : > { %v923_v47 = vpop.f32.mrf.mxu0 }
 0x2da   : > { %679 = vst [vmem:[%s337_s18] sm:$0xff] %v674_v46 }
 0x2db   : > { %v676_v48 = vpop.f32.mrf.mxu0 }
 0x2dc   : > { %1149 = shalt.err (!%p1146_p9)
}
 0x2dd   : > { %s1150_s9 = scalar_lea.hbm %s1451_s21, 128  ;;  %s1154_s10 = scalar_lea.hbm %s1501_s7, 256 }
 0x2de   : > { %p1151_p13 = scmp.ne.s32.totalorder %s1451_s21, %s1150_s9  ;;  %p1155_p11 = scmp.lt.s32.totalorder %s1451_s21, %s1501_s7 }
 0x2df   : > { %p1156_p1 = scmp.lt.s32.totalorder %s1154_s10, %s1150_s9 }
 0x2e0   : > { %p1152_p8 = pnand %p1151_p13, %p1523_p6 }
 0x2e1   : > { %p1157_p2 = por %p1156_p1, %p1155_p11 }
 0x2e2   : > { %p1153_p10 = pneg %p1152_p8 }
 0x2e4   : > { %p1158_p4 = pnand %p1157_p2, %p1153_p10 }
 0x2e6   : > { %1161 = shalt.err (!%p1158_p4)
}
 0x2e7   : > { %939 = dma.vmem_to_hbm [thread:$0]  (%p1523_p6), %s1453_s19, 128, %s1451_s21, %s681_s1   ;;  %v924_v49 = vpop.f32.mrf.mxu0 }
 0x2e8 PF: > { %s706_s22 = sand.u32 1, %s1196_s24   ;;  %p1524_p12 = scmp.ne.s32.totalorder %s1509_s8, 0 }
 0x2e9   : > { %p1525_p0 = scmp.ge.s32.totalorder %s1208_s27, 2  ;;  %s707_s18 = scalar_lea.sflag [#allocation4], %s706_s22 }
 0x2eb   : > { %p956_p5 = pnand %p1525_p0, %p1524_p12 }
 0x2ed   : > { %p957_p3 = pneg %p956_p5 }
 0x2ef   : > { %1191 = dma.done.wait (%p957_p3), %s707_s18, 128  }
 0x2f0   : > { %1193 = vsyncadd (%p957_p3), %s707_s18, 4294967168  ;;  %p22_p7 = scmp.ge.s32.totalorder %s1339_s14, 4   ;;  %s1526_s24 = smov %s1200_s25 }
 0x2f1   : > { %s1527_s25 = smov %s1204_s26  ;;  %s1528_s26 = smov %s1349_s17 }
 0x2f2   : > { %s1529_s27 = smov %s1339_s14  ;;  %24 = sbr.rel (!%p22_p7) target bundleno = 10 (0xa), region = 105 }
 0x2f7   :  { %712 = vsyncpa [#allocation3], 1 }
 0x2f8   :  { %714 = vsyncpa [#allocation3 + $0x1], 1 }
 0x2f9   :  { %715 = vsyncpa [#allocation6], 1 }
 0x2fa   :  { %716 = vsyncpa [#allocation9], 1 }
 0x2fb   :  { %717 = vsyncpa [#allocation4], 1 }
 0x2fc   :  { %719 = vsyncpa [#allocation4 + $0x1], 1 }

</bundles_post_ra>
